<compile_context>
chip_gen: v7x
topology: tpu7x:2x2x1
jax: 0.10.0
libtpu: 0.0.40
codegen_flags: <defaults>
</compile_context>

<pallas_src>
import jax
import jax.numpy as jnp
from jax.experimental import pallas as pl
from jax.experimental.pallas import tpu as pltpu


def _round_up(x, m):
    return ((x + m - 1) // m) * m


def _kcenter_kernel(a_ref, bt_ref, dmin_ref, minacc_ref):
    j = pl.program_id(1)            # reduction over B-column tiles
    nj = pl.num_programs(1)

    @pl.when(j == 0)
    def _():
        minacc_ref[...] = jnp.full(minacc_ref.shape, jnp.inf, minacc_ref.dtype)

    # Squared distances come straight out of the MXU:
    #   a_ref = [-2A | ||a||^2 | 1 | 0...],  bt_ref = [B^T ; 1 ; ||b||^2 ; 0...]
    d2 = jnp.dot(a_ref[...], bt_ref[...], preferred_element_type=jnp.float32)

    # Lane-dense running min: pure VPU elementwise mins into (tn, 128),
    # folding 128-lane-aligned static slices of the dot result.
    acc = minacc_ref[...]
    tm = d2.shape[1]
    for s in range(tm // 128):
        acc = jnp.minimum(acc, d2[:, s * 128:(s + 1) * 128])
    minacc_ref[...] = acc

    # Epilogue: one cross-lane reduce + clamp + sqrt per A tile.
    @pl.when(j == nj - 1)
    def _():
        row_min = jnp.min(minacc_ref[...], axis=1, keepdims=True)
        dmin_ref[...] = jnp.sqrt(jnp.maximum(row_min, 0.0))


def kcenter(A, B, tn=None, tm=None):
    """k-center step: (argmax_i min_j ||A_i - B_j||, max_i min_j ||A_i - B_j||)."""
    N, d = A.shape
    M, d_b = B.shape
    assert d == d_b, "A and B must share the feature dimension"

    K = d + 2                                    # [-2A | ||a||^2 | 1]
    K_pad = max(8, _round_up(K, 8))
    M_pad0 = _round_up(max(M, 1), 128)

    def ws_bytes(tn_, tm_):
        # Conservative per-step working set: double-buffered A' and B'^T
        # tiles, the (tn, tm) f32 dot result, the (tn, 128) accumulator and
        # a (lane-padded, double-buffered) output tile.
        return 4 * (2 * tn_ * K_pad + 2 * K_pad * tm_ + tn_ * tm_
                    + tn_ * 128 + 2 * tn_ * 128)

    vmem_budget = 24 << 20                       # headroom even on v7x (64 MiB)

    # --- row-tile (tn) selection -----------------------------------------
    auto_tn = tn is None
    if auto_tn:
        provisional_resident = (M_pad0 <= 8192
                                and ws_bytes(256, M_pad0) <= vmem_budget)
        # When B must be streamed, a bigger tn cuts B HBM re-reads (v5e).
        tn = 256 if provisional_resident else 512
    tn = _round_up(min(tn, max(N, 8)), 8)
    if auto_tn and N > 8 and pl.cdiv(N, tn) < 2:
        tn = _round_up(pl.cdiv(N, 2), 8)         # >= 2 i tiles -> both v7x TCs
    N_pad = _round_up(N, tn)

    # --- column-tile (tm) selection ---------------------------------------
    if tm is None:
        resident = (M_pad0 <= 8192 and ws_bytes(tn, M_pad0) <= vmem_budget)
        tm = M_pad0 if resident else min(2048, M_pad0)
    tm = _round_up(min(tm, M_pad0), 128)
    M_pad = _round_up(M_pad0, tm)
    resident = (tm == M_pad)

    # --- padding + contraction-folded operands (cheap O((N+M)d) XLA) -------
    Af = A.astype(jnp.float32)
    Bf = B.astype(jnp.float32)
    if N_pad > N:
        Af = jnp.concatenate(
            [Af, jnp.zeros((N_pad - N, d), jnp.float32)], axis=0)
    if M_pad > M:
        # Duplicate row 0: the column-wise min is unchanged by duplicates.
        Bf = jnp.concatenate(
            [Bf, jnp.broadcast_to(Bf[:1], (M_pad - M, d))], axis=0)

    na = jnp.sum(Af * Af, axis=1, keepdims=True)              # (N_pad, 1)
    nb = jnp.sum(Bf * Bf, axis=1, keepdims=True)              # (M_pad, 1)
    zpad_a = jnp.zeros((N_pad, K_pad - K), jnp.float32)
    zpad_b = jnp.zeros((M_pad, K_pad - K), jnp.float32)
    a_aug = jnp.concatenate(
        [-2.0 * Af, na, jnp.ones((N_pad, 1), jnp.float32), zpad_a], axis=1)
    b_aug = jnp.concatenate(
        [Bf, jnp.ones((M_pad, 1), jnp.float32), nb, zpad_b], axis=1)
    bt_aug = b_aug.T                                           # (K_pad, M_pad)

    grid = (N_pad // tn, M_pad // tm)

    if resident:
        # Constant block index: the B'^T slab is DMA'd once; single-buffer it
        # so the resident copy isn't duplicated in VMEM.
        b_spec = pl.BlockSpec((K_pad, tm), lambda i, j: (0, j),
                              pipeline_mode=pl.Buffered(1))
    else:
        b_spec = pl.BlockSpec((K_pad, tm), lambda i, j: (0, j))

    b_reads = 1 if resident else (N_pad // tn)
    cost = pl.CostEstimate(
        flops=2 * N_pad * M_pad * K_pad,
        transcendentals=N_pad,
        bytes_accessed=4 * (N_pad * K_pad + b_reads * M_pad * K_pad + N_pad),
    )
    vmem_limit = int(min(40 << 20, max(32 << 20, 2 * ws_bytes(tn, tm))))

    d_min = pl.pallas_call(
        _kcenter_kernel,
        out_shape=jax.ShapeDtypeStruct((N_pad, 1), jnp.float32),
        grid_spec=pltpu.PrefetchScalarGridSpec(
            num_scalar_prefetch=0,
            grid=grid,
            in_specs=[
                pl.BlockSpec((tn, K_pad), lambda i, j: (i, 0)),   # A' tile
                b_spec,                                           # B'^T tile
            ],
            out_specs=pl.BlockSpec((tn, 1), lambda i, j: (i, 0)),
            scratch_shapes=[pltpu.VMEM((tn, 128), jnp.float32)],
        ),
        compiler_params=pltpu.CompilerParams(
            dimension_semantics=("parallel", "arbitrary"),
            vmem_limit_bytes=vmem_limit),
        cost_estimate=cost,
    )(a_aug, bt_aug)

    d_min = d_min[:N, 0]
    # TODO(synk): torch.argmax returns int64; jnp.argmax yields int32 on TPU
    # and tie-breaking between exactly-equal rows may differ from torch.
    return jnp.argmax(d_min), jnp.max(d_min)


if __name__ == "__main__":
    key = jax.random.PRNGKey(0)

    def reference_dmin(A, B):
        na = jnp.sum(A ** 2, axis=1)[:, None]
        nb = jnp.sum(B ** 2, axis=1)[None, :]
        D = jnp.sqrt(jnp.maximum(na - 2.0 * (A @ B.T) + nb, 0.0))
        return jnp.min(D, axis=1)

    def check(A, B, **kw):
        dmin_ref = reference_dmin(A, B)
        ref_max = float(jnp.max(dmin_ref))
        arg, mx = kcenter(A, B, **kw)
        jax.block_until_ready((arg, mx))
        tol = 1e-3 * max(1.0, abs(ref_max))
        assert abs(float(mx) - ref_max) <= tol, (float(mx), ref_max)
        assert abs(float(dmin_ref[int(arg)]) - ref_max) <= tol

    ka, kb = jax.random.split(key)
    A = jax.random.normal(ka, (512, 32), dtype=jnp.float32)
    B = jax.random.normal(kb, (384, 32), dtype=jnp.float32)

    # 1) default config: B'^T fully resident (single-buffered), grid = (2, 1).
    check(A, B)

    # 2) explicitly tiled streaming config exercising both grid axes (4, 3).
    check(A, B, tn=128, tm=128)

    # 3) ragged shapes exercising the N / M / K padding paths.
    kc, kd = jax.random.split(kb)
    A2 = jax.random.normal(kc, (200, 17), dtype=jnp.float32)
    B2 = jax.random.normal(kd, (150, 17), dtype=jnp.float32)
    check(A2, B2)

    print("KERNEL_OK")
</pallas_src>

<mosaic_0001>
module attributes {stable_mosaic.version = 11 : i64} {
  func.func @_kcenter_kernel(%arg0: i32, %arg1: i32, %arg2: memref<256x40xf32, #tpu.memory_space<vmem>>, %arg3: memref<40x384xf32, #tpu.memory_space<vmem>>, %arg4: memref<256x1xf32, #tpu.memory_space<vmem>>, %arg5: memref<256x128xf32, #tpu.memory_space<vmem>>) attributes {dimension_semantics = [#tpu.dimension_semantics<parallel>, #tpu.dimension_semantics<arbitrary>], iteration_bounds = array<i64: 2, 1>, scalar_prefetch = 0 : i64, scratch_operands = 1 : i64, tpu.core_type = #tpu.core_type<tc>, window_params = [{transform_indices = @transform_0, window_bounds = array<i64: 256, 40>}, {pipeline_mode = #tpu.pipeline_mode<synchronous>, transform_indices = @transform_1, window_bounds = array<i64: 40, 384>}, {transform_indices = @transform_2, window_bounds = array<i64: 256, 1>}]} {
    %c0_i32 = arith.constant 0 : i32
    %0 = arith.cmpi eq, %arg1, %c0_i32 : i32
    %1 = arith.extui %0 : i1 to i32
    %c0_i32_0 = arith.constant 0 : i32
    %2 = arith.cmpi ne, %1, %c0_i32_0 : i32
    scf.if %2 {
      %cst_10 = arith.constant 0x7F800000 : f32
      %17 = vector.broadcast %cst_10 : f32 to vector<256x128xf32>
      %c0_11 = arith.constant 0 : index
      %c0_12 = arith.constant 0 : index
      %18 = vector.load %arg5[%c0_11, %c0_12] : memref<256x128xf32, #tpu.memory_space<vmem>>, vector<256x128xf32>
      tpu.vector_store %arg5[%c0_11, %c0_12], %17 {strides = array<i32>} : memref<256x128xf32, #tpu.memory_space<vmem>>, vector<256x128xf32>,
    } else {
    }
    %c0 = arith.constant 0 : index
    %c0_1 = arith.constant 0 : index
    %3 = vector.load %arg2[%c0, %c0_1] : memref<256x40xf32, #tpu.memory_space<vmem>>, vector<256x40xf32>
    %c0_2 = arith.constant 0 : index
    %c0_3 = arith.constant 0 : index
    %4 = vector.load %arg3[%c0_2, %c0_3] : memref<40x384xf32, #tpu.memory_space<vmem>>, vector<40x384xf32>
    %cst = arith.constant dense<0.000000e+00> : vector<256x384xf32>
    %5 = tpu.matmul %3, %4, %cst {dimension_numbers = #tpu.dot_dimension_numbers<[1], [0], [0], [1], [0, 0, 1, 1], [], []>} : vector<256x40xf32>, vector<40x384xf32>, vector<256x384xf32> -> vector<256x384xf32>
    %c0_4 = arith.constant 0 : index
    %c0_5 = arith.constant 0 : index
    %6 = vector.load %arg5[%c0_4, %c0_5] : memref<256x128xf32, #tpu.memory_space<vmem>>, vector<256x128xf32>
    %7 = vector.extract_strided_slice %5 {offsets = [0, 0], sizes = [256, 128], strides = [1, 1]} : vector<256x384xf32> to vector<256x128xf32>
    %8 = arith.minimumf %6, %7 : vector<256x128xf32>
    %9 = vector.extract_strided_slice %5 {offsets = [0, 128], sizes = [256, 128], strides = [1, 1]} : vector<256x384xf32> to vector<256x128xf32>
    %10 = arith.minimumf %8, %9 : vector<256x128xf32>
    %11 = vector.extract_strided_slice %5 {offsets = [0, 256], sizes = [256, 128], strides = [1, 1]} : vector<256x384xf32> to vector<256x128xf32>
    %12 = arith.minimumf %10, %11 : vector<256x128xf32>
    %c0_6 = arith.constant 0 : index
    %c0_7 = arith.constant 0 : index
    %13 = vector.load %arg5[%c0_6, %c0_7] : memref<256x128xf32, #tpu.memory_space<vmem>>, vector<256x128xf32>
    tpu.vector_store %arg5[%c0_6, %c0_7], %12 {strides = array<i32>} : memref<256x128xf32, #tpu.memory_space<vmem>>, vector<256x128xf32>,
    %c0_i32_8 = arith.constant 0 : i32
    %14 = arith.cmpi eq, %arg1, %c0_i32_8 : i32
    %15 = arith.extui %14 : i1 to i32
    %c0_i32_9 = arith.constant 0 : i32
    %16 = arith.cmpi ne, %15, %c0_i32_9 : i32
    scf.if %16 {
      %c0_10 = arith.constant 0 : index
      %c0_11 = arith.constant 0 : index
      %17 = vector.load %arg5[%c0_10, %c0_11] : memref<256x128xf32, #tpu.memory_space<vmem>>, vector<256x128xf32>
      %cst_12 = arith.constant dense<0x7F800000> : vector<256xf32>
      %18 = vector.multi_reduction <minimumf>, %17, %cst_12 [1] : vector<256x128xf32> to vector<256xf32>
      %19 = vector.shape_cast %18 : vector<256xf32> to vector<256x1xf32>
      %cst_13 = arith.constant 0.000000e+00 : f32
      %20 = vector.broadcast %cst_13 : f32 to vector<256x1xf32>
      %21 = arith.maximumf %19, %20 : vector<256x1xf32>
      %22 = math.sqrt %21 : vector<256x1xf32>
      %c0_14 = arith.constant 0 : index
      %c0_15 = arith.constant 0 : index
      %23 = vector.load %arg4[%c0_14, %c0_15] : memref<256x1xf32, #tpu.memory_space<vmem>>, vector<256x1xf32>
      tpu.vector_store %arg4[%c0_14, %c0_15], %22 {strides = array<i32>} : memref<256x1xf32, #tpu.memory_space<vmem>>, vector<256x1xf32>,
    } else {
    }
    return
  }
  func.func @transform_0(%arg0: i32, %arg1: i32) -> (i32, i32) {
    %c0_i32 = arith.constant 0 : i32
    %c0_i32_0 = arith.constant 0 : i32
    return %arg0, %c0_i32 : i32, i32
  }
  func.func @transform_1(%arg0: i32, %arg1: i32) -> (i32, i32) {
    %c0_i32 = arith.constant 0 : i32
    %c0_i32_0 = arith.constant 0 : i32
    return %c0_i32, %arg1 : i32, i32
  }
  func.func @transform_2(%arg0: i32, %arg1: i32) -> (i32, i32) {
    %c0_i32 = arith.constant 0 : i32
    %c0_i32_0 = arith.constant 0 : i32
    return %arg0, %c0_i32 : i32, i32
  }
}

</mosaic_0001>

<bundles_post_ra>
// kernel: tpu_custom_call.1
= control target key start
LH: loop header
LB: loop body
LE: loop exit
PB: predicated region body
PF: predicated region fallthrough
CT: control target
= control target key end

     0   :  { %s1793_s9 = smov 0   ;;  %s1795_s10 = smov 0   ;;  %s2386_s0 = inlined_call_operand.vmem [shape: f32[512,40], index: 0, kind: input, shape index: {}]   ;;  %s2387_s1 = inlined_call_operand.vmem [shape: f32[40,384], index: 1, kind: input, shape index: {}]   ;;  %s2388_s2 = inlined_call_operand.vmem [shape: f32[512,1], index: 2, kind: output, shape index: {}]  }
   0x1   :  { %s1797_s11 = smov 0  }
   0x2 LB: > { %s24_s12 = sadd.s32 1, %s1771_s10  ;;  %p1476_p0 = scmp.ge.s32.totalorder %s1775_s11, 1  ;;  %s1775_s11 = sphi %s1797_s11, %s12_s11   ;;  %s1771_s10 = sphi %s1795_s10, %s2390_s10   ;;  %s1767_s9 = sphi %s1793_s9, %s2389_s9  }
   0x3   : > { %p26_p1 = scmp.ge.s32.totalorder %s24_s12, 2  ;;  %p136_p2 = scmp.lt.s32.totalorder %s1775_s11, 3 }
   0x5   : > { %s2392_s12 = smov (%p26_p1, %s24_s12), 0  ;;  %p137_p3 = pnand %p1476_p0, %p136_p2 }
   0x6   : > { %v250_v0 = vld [vmem:[%s2387_s1 + $0x8] sm:$0xff] (!%p137_p3)  ;;  %v253_v1 = vld [vmem:[%s2387_s1 + $0x20] sm:$0xff] (!%p137_p3)  ;;  %s1477_s19 = sshll.u32 (!%p137_p3), %s1767_s9, 5  ;;  %v252_v4 = vld [vmem:[%s2387_s1 + $0x18] sm:$0xff] (!%p137_p3)  ;;  %v1777_v7 = vmov (!%p137_p3), 0.0   ;;  %vm264_vm0 = vcmask (!%p137_p3), 326656  }
   0x7   : > { %140 = sbr.rel (%p137_p3) target bundleno = 496 (0x1f0), region = 28  ;;  %v249_v2 = vld [vmem:[%s2387_s1] sm:$0xff] (!%p137_p3)  ;;  %v1642_v3 = vpack.c.bf16 (!%p137_p3), %v253_v1, %v250_v0  ;;  %v256_v5 = vld [vmem:[%s2387_s1 + $0x38] sm:$0xff] (!%p137_p3)  ;;  %v259_v6 = vld [vmem:[%s2387_s1 + $0x50] sm:$0xff] (!%p137_p3)  ;;  %425 = vmatprep.mubr.f32.mxu0 (!%p137_p3), %v1777_v7  ;;  %569 = vmatprep.mubr.f32.mxu1 (!%p137_p3), %v1777_v7  ;;  %p164_p4 = scmp.lt.s32.totalorder (!%p137_p3), %s1477_s19, 63  ;;  %vm1358_vm1 = vcmask (!%p137_p3), 7168  }
   0x8   : > { %v1644_v8 = vpack.c.bf16 (!%p137_p3), %v252_v4, %v249_v2  ;;  %v1646_v9 = vpack.c.bf16 (!%p137_p3), %v259_v6, %v256_v5  ;;  %v255_v10 = vld [vmem:[%s2387_s1 + $0x30] sm:$0xff] (!%p137_p3)  ;;  %v258_v11 = vld [vmem:[%s2387_s1 + $0x48] sm:$0xff] (!%p137_p3)  ;;  %v261_v16 = vld [vmem:[%s2387_s1 + $0x60] sm:$0xff] (!%p137_p3) }
   0x9   : > { %1643 = vmatprep.subr.bf16.mxu0 (!%p137_p3), %v1642_v3  ;;  %1658 = vmatprep.subr.bf16.mxu1 (!%p137_p3), %v1642_v3  ;;  %v1648_v12 = vpack.c.bf16 (!%p137_p3), %v258_v11, %v255_v10  ;;  %v262_v13 = vld [vmem:[%s2387_s1 + $0x68] sm:$0xff] (!%p137_p3)  ;;  %v251_v14 = vld [vmem:[%s2387_s1 + $0x10] sm:$0xff] (!%p137_p3)  ;;  %v257_v17 = vld [vmem:[%s2387_s1 + $0x40] sm:$0xff] (!%p137_p3) }
   0xa   : > { %1645 = vmatpush1.bf16.msra.mxu0 (!%p137_p3), %v1644_v8  ;;  %1661 = vmatpush1.bf16.msra.mxu1 (!%p137_p3), %v1644_v8  ;;  %v254_v15 = vld [vmem:[%s2387_s1 + $0x28] sm:$0xff] (!%p137_p3)  ;;  %v260_v18 = vld [vmem:[%s2387_s1 + $0x58] sm:$0xff] (!%p137_p3)  ;;  %v263_v25 = vld [vmem:[%s2387_s1 + $0x70] sm:$0xff] (!%p137_p3) }
   0xb   : > { %1647 = vmatprep.subr.bf16.mxu0 (!%p137_p3), %v1646_v9  ;;  %1659 = vmatprep.subr.bf16.mxu1 (!%p137_p3), %v1646_v9  ;;  %v1650_v21 = vpack.c.bf16 (!%p137_p3), %v254_v15, %v251_v14  ;;  %v1654_v22 = vpack.c.bf16 (!%p137_p3), %v260_v18, %v257_v17 }
   0xe   : > { %s2394_s19 = smov (!%p164_p4, %s1477_s19), 63  ;;  %1649 = vmatpush1.bf16.msra.mxu0 %v1648_v12  ;;  %1662 = vmatpush1.bf16.msra.mxu1 %v1648_v12 }
   0xf   : > { %s1478_s30 = sshll.u32 %s2394_s19, 3  ;;  %369 = vmatprep.subr.mxu0 %v262_v13  ;;  %1660 = vmatprep.subr.mxu1 %v262_v13 }
  0x10   : > { %s1848_s7 = scalar_lea.vmem %s2386_s0, %s1478_s30  ;;  %s2110_s26 = scalar_lea.vmem %s2388_s2, %s1478_s30 }
  0x11   : > { %v217_v19 = vld [vmem:[%s1848_s7] sm:$0xff]  ;;  %v218_v23 = vld [vmem:[%s1848_s7 + $0x8] sm:$0xff]  ;;  %v219_v26 = vld [vmem:[%s1848_s7 + $0x10] sm:$0xff] }
  0x12   : > { %v1867_v20 = vld [vmem:[%s1848_s7 + $0xc0] sm:$0xff]  ;;  %370 = vmatpush1.msra.mxu0 %v261_v16  ;;  %1663 = vmatpush1.msra.mxu1 %v261_v16  ;;  %v1875_v24 = vld [vmem:[%s1848_s7 + $0xc8] sm:$0xff]  ;;  %v1888_v27 = vld [vmem:[%s1848_s7 + $0xd0] sm:$0xff] }
  0x13   : > { %1481 = vmatmul.mubr.msk.f32.vlgmr.msra.gmra.mrb[0].mxu0 %vm264_vm0, %v217_v19  ;;  %1505 = vmatmul.mubr.msk.f32.vlgmr.msra.gmra.mrb[0].mxu1 %vm264_vm0, %v1867_v20  ;;  %v220_v28 = vld [vmem:[%s1848_s7 + $0x18] sm:$0xff]  ;;  %v221_v30 = vld [vmem:[%s1848_s7 + $0x20] sm:$0xff]  ;;  %v222_v32 = vld [vmem:[%s1848_s7 + $0x28] sm:$0xff] }
  0x14   : > { %1651 = vmatprep.subr.bf16.mxu1 %v1650_v21  ;;  %431 = vmatprep.mubr.f32.mxu0 %v1777_v7  ;;  %v1897_v29 = vld [vmem:[%s1848_s7 + $0xd8] sm:$0xff]  ;;  %v1906_v31 = vld [vmem:[%s1848_s7 + $0xe0] sm:$0xff]  ;;  %v1915_v33 = vld [vmem:[%s1848_s7 + $0xe8] sm:$0xff] }
  0x15   : > { %1653 = vmatpush3.bf16.msra.mxu1 %v1650_v21  ;;  %575 = vmatprep.mubr.f32.mxu1 %v1777_v7  ;;  %v223_v34 = vld [vmem:[%s1848_s7 + $0x30] sm:$0xff]  ;;  %v224_v36 = vld [vmem:[%s1848_s7 + $0x38] sm:$0xff]  ;;  %v225_v38 = vld [vmem:[%s1848_s7 + $0x40] sm:$0xff] }
  0x16   : > { %1655 = vmatprep.subr.bf16.mxu1 %v1654_v22  ;;  %v1924_v35 = vld [vmem:[%s1848_s7 + $0xf0] sm:$0xff]  ;;  %v1933_v37 = vld [vmem:[%s1848_s7 + $0xf8] sm:$0xff]  ;;  %v226_v39 = vld [vmem:[%s1848_s7 + $0x48] sm:$0xff] }
  0x17   : > { %1482 = vmatmul.mubr.msk.f32.gmra.mrb[2].mxu0 %vm264_vm0, %v218_v23  ;;  %1506 = vmatmul.mubr.msk.f32.gmra.mrb[2].mxu1 %vm264_vm0, %v1875_v24  ;;  %v227_v40 = vld [vmem:[%s1848_s7 + $0x50] sm:$0xff]  ;;  %v228_v41 = vld [vmem:[%s1848_s7 + $0x58] sm:$0xff]  ;;  %v229_v42 = vld [vmem:[%s1848_s7 + $0x60] sm:$0xff] }
  0x18   : > { %437 = vmatprep.mubr.f32.mxu0 %v1777_v7  ;;  %581 = vmatprep.mubr.f32.mxu1 %v1777_v7  ;;  %v230_v43 = vld [vmem:[%s1848_s7 + $0x68] sm:$0xff]  ;;  %v231_v44 = vld [vmem:[%s1848_s7 + $0x70] sm:$0xff]  ;;  %v232_v45 = vld [vmem:[%s1848_s7 + $0x78] sm:$0xff] }
  0x19   : > { %1657 = vmatpush3.bf16.msra.mxu1 %v1654_v22  ;;  %v233_v46 = vld [vmem:[%s1848_s7 + $0x80] sm:$0xff]  ;;  %v234_v47 = vld [vmem:[%s1848_s7 + $0x88] sm:$0xff]  ;;  %v235_v48 = vld [vmem:[%s1848_s7 + $0x90] sm:$0xff] }
  0x1a   : > { %1592 = vmatprep.subr.mxu1 %v263_v25  ;;  %v236_v49 = vld [vmem:[%s1848_s7 + $0x98] sm:$0xff]  ;;  %v237_v50 = vld [vmem:[%s1848_s7 + $0xa0] sm:$0xff]  ;;  %v238_v51 = vld [vmem:[%s1848_s7 + $0xa8] sm:$0xff] }
  0x1b   : > { %1483 = vmatmul.mubr.msk.f32.gmra.mrb[4].mxu0 %vm264_vm0, %v219_v26  ;;  %1507 = vmatmul.mubr.msk.f32.gmra.mrb[4].mxu1 %vm264_vm0, %v1888_v27  ;;  %v239_v52 = vld [vmem:[%s1848_s7 + $0xb0] sm:$0xff]  ;;  %v240_v53 = vld [vmem:[%s1848_s7 + $0xb8] sm:$0xff] }
  0x1c   : > { %443 = vmatprep.mubr.f32.mxu0 %v1777_v7  ;;  %587 = vmatprep.mubr.f32.mxu1 %v1777_v7 }
  0x1d   : > { %1593 = vmatpush3.msra.mxu1 %v263_v25 }
  0x1f   : > { %1484 = vmatmul.mubr.msk.f32.gmra.mrb[6].mxu0 %vm264_vm0, %v220_v28  ;;  %1508 = vmatmul.mubr.msk.f32.gmra.mrb[6].mxu1 %vm264_vm0, %v1897_v29 }
  0x20   : > { %449 = vmatprep.mubr.f32.mxu0 %v1777_v7  ;;  %593 = vmatprep.mubr.f32.mxu1 %v1777_v7 }
  0x23   : > { %1485 = vmatmul.mubr.msk.f32.gmra.mrb[8].mxu0 %vm264_vm0, %v221_v30  ;;  %1509 = vmatmul.mubr.msk.f32.gmra.mrb[8].mxu1 %vm264_vm0, %v1906_v31 }
  0x24   : > { %455 = vmatprep.mubr.f32.mxu0 %v1777_v7  ;;  %599 = vmatprep.mubr.f32.mxu1 %v1777_v7 }
  0x27   : > { %1486 = vmatmul.mubr.msk.f32.gmra.mrb[10].mxu0 %vm264_vm0, %v222_v32  ;;  %1510 = vmatmul.mubr.msk.f32.gmra.mrb[10].mxu1 %vm264_vm0, %v1915_v33 }
  0x28   : > { %461 = vmatprep.mubr.f32.mxu0 %v1777_v7  ;;  %605 = vmatprep.mubr.f32.mxu1 %v1777_v7 }
  0x2b   : > { %1487 = vmatmul.mubr.msk.f32.gmra.mrb[12].mxu0 %vm264_vm0, %v223_v34  ;;  %1511 = vmatmul.mubr.msk.f32.gmra.mrb[12].mxu1 %vm264_vm0, %v1924_v35 }
  0x2c   : > { %467 = vmatprep.mubr.f32.mxu0 %v1777_v7  ;;  %611 = vmatprep.mubr.f32.mxu1 %v1777_v7 }
  0x2f   : > { %1488 = vmatmul.mubr.msk.f32.gmra.mrb[14].mxu0 %vm264_vm0, %v224_v36  ;;  %1512 = vmatmul.mubr.msk.f32.gmra.mrb[14].mxu1 %vm264_vm0, %v1933_v37 }
  0x30   : > { %473 = vmatprep.mubr.f32.mxu0 %v1777_v7  ;;  %1594 = vmatprep.mubr.msk.f32.mxu1 %vm264_vm0, %v217_v19 }
  0x33   : > { %1489 = vmatmul.mubr.msk.f32.gmra.mrb[16].mxu0 %vm264_vm0, %v225_v38  ;;  %1595 = vmatmul.mubr.msk.f32.vlgmr.msra.gmra.mrb[16].mxu1 %vm264_vm0, %v218_v23 }
  0x34   : > { %479 = vmatprep.mubr.f32.mxu0 %v1777_v7  ;;  %1597 = vmatprep.mubr.msk.f32.mxu1 %vm264_vm0, %v219_v26 }
  0x37   : > { %1490 = vmatmul.mubr.msk.f32.gmra.mrb[18].mxu0 %vm264_vm0, %v226_v39  ;;  %1598 = vmatmul.mubr.msk.f32.gmra.mrb[18].mxu1 %vm264_vm0, %v220_v28 }
  0x38   : > { %485 = vmatprep.mubr.f32.mxu0 %v1777_v7  ;;  %1600 = vmatprep.mubr.msk.f32.mxu1 %vm264_vm0, %v221_v30 }
  0x3b   : > { %1491 = vmatmul.mubr.msk.f32.gmra.mrb[20].mxu0 %vm264_vm0, %v227_v40  ;;  %1601 = vmatmul.mubr.msk.f32.gmra.mrb[20].mxu1 %vm264_vm0, %v222_v32 }
  0x3c   : > { %491 = vmatprep.mubr.f32.mxu0 %v1777_v7  ;;  %1603 = vmatprep.mubr.msk.f32.mxu1 %vm264_vm0, %v223_v34 }
  0x3f   : > { %1492 = vmatmul.mubr.msk.f32.gmra.mrb[22].mxu0 %vm264_vm0, %v228_v41  ;;  %1604 = vmatmul.mubr.msk.f32.gmra.mrb[22].mxu1 %vm264_vm0, %v224_v36 }
  0x40   : > { %497 = vmatprep.mubr.f32.mxu0 %v1777_v7  ;;  %1606 = vmatprep.mubr.msk.f32.mxu1 %vm264_vm0, %v225_v38 }
  0x43   : > { %1493 = vmatmul.mubr.msk.f32.gmra.mrb[24].mxu0 %vm264_vm0, %v229_v42  ;;  %1607 = vmatmul.mubr.msk.f32.gmra.mrb[24].mxu1 %vm264_vm0, %v226_v39 }
  0x44   : > { %503 = vmatprep.mubr.f32.mxu0 %v1777_v7  ;;  %1609 = vmatprep.mubr.msk.f32.mxu1 %vm264_vm0, %v227_v40 }
  0x47   : > { %1494 = vmatmul.mubr.msk.f32.gmra.mrb[26].mxu0 %vm264_vm0, %v230_v43  ;;  %1610 = vmatmul.mubr.msk.f32.gmra.mrb[26].mxu1 %vm264_vm0, %v228_v41 }
  0x48   : > { %509 = vmatprep.mubr.f32.mxu0 %v1777_v7  ;;  %1612 = vmatprep.mubr.msk.f32.mxu1 %vm264_vm0, %v229_v42 }
  0x4b   : > { %1495 = vmatmul.mubr.msk.f32.gmra.mrb[28].mxu0 %vm264_vm0, %v231_v44  ;;  %1613 = vmatmul.mubr.msk.f32.gmra.mrb[28].mxu1 %vm264_vm0, %v230_v43 }
  0x4c   : > { %515 = vmatprep.mubr.f32.mxu0 %v1777_v7  ;;  %1615 = vmatprep.mubr.msk.f32.mxu1 %vm264_vm0, %v231_v44 }
  0x4f   : > { %1496 = vmatmul.mubr.msk.f32.gmra.mrb[30].mxu0 %vm264_vm0, %v232_v45  ;;  %1616 = vmatmul.mubr.msk.f32.gmra.mrb[30].mxu1 %vm264_vm0, %v232_v45 }
  0x50   : > { %521 = vmatprep.mubr.f32.mxu0 %v1777_v7  ;;  %1618 = vmatprep.mubr.msk.f32.mxu1 %vm264_vm0, %v233_v46 }
  0x53   : > { %1497 = vmatmul.mubr.msk.f32.gmra.mrb[32].mxu0 %vm264_vm0, %v233_v46  ;;  %1619 = vmatmul.mubr.msk.f32.gmra.mrb[32].mxu1 %vm264_vm0, %v234_v47 }
  0x54   : > { %527 = vmatprep.mubr.f32.mxu0 %v1777_v7  ;;  %1621 = vmatprep.mubr.msk.f32.mxu1 %vm264_vm0, %v235_v48 }
  0x57   : > { %1498 = vmatmul.mubr.msk.f32.gmra.mrb[34].mxu0 %vm264_vm0, %v234_v47  ;;  %1622 = vmatmul.mubr.msk.f32.gmra.mrb[34].mxu1 %vm264_vm0, %v236_v49 }
  0x58   : > { %533 = vmatprep.mubr.f32.mxu0 %v1777_v7  ;;  %1624 = vmatprep.mubr.msk.f32.mxu1 %vm264_vm0, %v237_v50 }
  0x5b   : > { %1499 = vmatmul.mubr.msk.f32.gmra.mrb[36].mxu0 %vm264_vm0, %v235_v48  ;;  %1625 = vmatmul.mubr.msk.f32.gmra.mrb[36].mxu1 %vm264_vm0, %v238_v51 }
  0x5c   : > { %539 = vmatprep.mubr.f32.mxu0 %v1777_v7  ;;  %1627 = vmatprep.mubr.msk.f32.mxu1 %vm264_vm0, %v239_v52 }
  0x5f   : > { %1500 = vmatmul.mubr.msk.f32.gmra.mrb[38].mxu0 %vm264_vm0, %v236_v49  ;;  %1628 = vmatmul.mubr.msk.f32.gmra.mrb[38].mxu1 %vm264_vm0, %v240_v53 }
  0x60   : > { %545 = vmatprep.mubr.f32.mxu0 %v1777_v7  ;;  %1630 = vmatprep.mubr.msk.f32.mxu1 %vm264_vm0, %v1867_v20 }
  0x63   : > { %1501 = vmatmul.mubr.msk.f32.gmra.mrb[40].mxu0 %vm264_vm0, %v237_v50  ;;  %1631 = vmatmul.mubr.msk.f32.gmra.mrb[40].mxu1 %vm264_vm0, %v1875_v24 }
  0x64   : > { %551 = vmatprep.mubr.f32.mxu0 %v1777_v7  ;;  %1633 = vmatprep.mubr.msk.f32.mxu1 %vm264_vm0, %v1888_v27 }
  0x67   : > { %1502 = vmatmul.mubr.msk.f32.gmra.mrb[42].mxu0 %vm264_vm0, %v238_v51  ;;  %1634 = vmatmul.mubr.msk.f32.gmra.mrb[42].mxu1 %vm264_vm0, %v1897_v29 }
  0x68   : > { %557 = vmatprep.mubr.f32.mxu0 %v1777_v7  ;;  %1636 = vmatprep.mubr.msk.f32.mxu1 %vm264_vm0, %v1906_v31 }
  0x6b   : > { %1503 = vmatmul.mubr.msk.f32.gmra.mrb[44].mxu0 %vm264_vm0, %v239_v52  ;;  %1637 = vmatmul.mubr.msk.f32.gmra.mrb[44].mxu1 %vm264_vm0, %v1915_v33 }
  0x6c   : > { %563 = vmatprep.mubr.f32.mxu0 %v1777_v7  ;;  %1639 = vmatprep.mubr.msk.f32.mxu1 %vm264_vm0, %v1924_v35 }
  0x6f   : > { %1504 = vmatmul.mubr.msk.f32.gmra.mrb[46].mxu0 %vm264_vm0, %v240_v53  ;;  %1640 = vmatmul.mubr.msk.f32.gmra.mrb[46].mxu1 %vm264_vm0, %v1933_v37 }
  0xe6   : > { %v427_v54 = vpop.f32.mrb[0].mxu0  ;;  %v2026_v55 = vpop.f32.mrb[0].mxu1 }
  0xe7   : > { %v429_v56 = vpop.f32.mrb[1].mxu0  ;;  %v2028_v57 = vpop.f32.mrb[1].mxu1 }
  0xe8   : > { %v907_v58 = vmin.f32 %v427_v54, %v429_v56  ;;  %v931_v59 = vmin.f32 %v2026_v55, %v2028_v57 }
  0xea   : > { %v433_v60 = vpop.f32.mrb[2].mxu0  ;;  %v2032_v61 = vpop.f32.mrb[2].mxu1 }
  0xeb   : > { %v435_v62 = vpop.f32.mrb[3].mxu0  ;;  %v2034_v63 = vpop.f32.mrb[3].mxu1 }
  0xec   : > { %v908_v0 = vmin.f32 %v433_v60, %v435_v62  ;;  %v932_v1 = vmin.f32 %v2032_v61, %v2034_v63 }
  0xee   : > { %v439_v2 = vpop.f32.mrb[4].mxu0  ;;  %v2038_v3 = vpop.f32.mrb[4].mxu1 }
  0xef   : > { %v441_v4 = vpop.f32.mrb[5].mxu0  ;;  %v2040_v5 = vpop.f32.mrb[5].mxu1 }
  0xf0   : > { %v909_v6 = vmin.f32 %v439_v2, %v441_v4  ;;  %v933_v7 = vmin.f32 %v2038_v3, %v2040_v5 }
  0xf2   : > { %v445_v8 = vpop.f32.mrb[6].mxu0  ;;  %v2044_v9 = vpop.f32.mrb[6].mxu1 }
  0xf3   : > { %v447_v10 = vpop.f32.mrb[7].mxu0  ;;  %v2046_v11 = vpop.f32.mrb[7].mxu1 }
  0xf4   : > { %v910_v12 = vmin.f32 %v445_v8, %v447_v10  ;;  %v934_v13 = vmin.f32 %v2044_v9, %v2046_v11 }
  0xf6   : > { %v451_v14 = vpop.f32.mrb[8].mxu0  ;;  %v2050_v15 = vpop.f32.mrb[8].mxu1 }
  0xf7   : > { %v453_v16 = vpop.f32.mrb[9].mxu0  ;;  %v2052_v17 = vpop.f32.mrb[9].mxu1 }
  0xf8   : > { %v911_v18 = vmin.f32 %v451_v14, %v453_v16  ;;  %v935_v19 = vmin.f32 %v2050_v15, %v2052_v17 }
  0xfa   : > { %v457_v20 = vpop.f32.mrb[10].mxu0  ;;  %v2056_v21 = vpop.f32.mrb[10].mxu1 }
  0xfb   : > { %v459_v22 = vpop.f32.mrb[11].mxu0  ;;  %v2058_v23 = vpop.f32.mrb[11].mxu1 }
  0xfc   : > { %v912_v24 = vmin.f32 %v457_v20, %v459_v22  ;;  %v936_v25 = vmin.f32 %v2056_v21, %v2058_v23 }
  0xfe   : > { %v463_v26 = vpop.f32.mrb[12].mxu0  ;;  %v2062_v27 = vpop.f32.mrb[12].mxu1 }
  0xff   : > { %v465_v28 = vpop.f32.mrb[13].mxu0  ;;  %v2064_v29 = vpop.f32.mrb[13].mxu1 }
 0x100   : > { %v913_v30 = vmin.f32 %v463_v26, %v465_v28  ;;  %v937_v31 = vmin.f32 %v2062_v27, %v2064_v29 }
 0x102   : > { %v469_v32 = vpop.f32.mrb[14].mxu0  ;;  %v2068_v33 = vpop.f32.mrb[14].mxu1 }
 0x103   : > { %v471_v34 = vpop.f32.mrb[15].mxu0  ;;  %v2070_v35 = vpop.f32.mrb[15].mxu1 }
 0x104   : > { %v914_v36 = vmin.f32 %v469_v32, %v471_v34  ;;  %v938_v37 = vmin.f32 %v2068_v33, %v2070_v35 }
 0x106   : > { %v475_v38 = vpop.f32.mrb[16].mxu0  ;;  %v1596_v39 = vpop.f32.mrb[16].mxu1 }
 0x107   : > { %v477_v40 = vpop.f32.mrb[17].mxu0  ;;  %v684_v41 = vpop.f32.mrb[17].mxu1  ;;  %v940_v42 = vmin.f32 %v908_v0, %v1596_v39 }
 0x108   : > { %v915_v43 = vmin.f32 %v475_v38, %v477_v40  ;;  %v939_v44 = vmin.f32 %v907_v58, %v684_v41 }
 0x109   : > { %1040 = vmin.xlane.f32.xlu0 %v940_v42 }
 0x10a   : > { %v481_v45 = vpop.f32.mrb[18].mxu0  ;;  %v1599_v46 = vpop.f32.mrb[18].mxu1 }
 0x10b   : > { %v483_v47 = vpop.f32.mrb[19].mxu0  ;;  %v694_v48 = vpop.f32.mrb[19].mxu1  ;;  %v942_v49 = vmin.f32 %v910_v12, %v1599_v46 }
 0x10c   : > { %v916_v50 = vmin.f32 %v481_v45, %v483_v47  ;;  %v941_v51 = vmin.f32 %v909_v6, %v694_v48 }
 0x10d   : > { %1038 = vmin.xlane.f32.xlu0 %v939_v44  ;;  %1044 = vmin.xlane.f32.xlu1 %v942_v49 }
 0x10e   : > { %v487_v52 = vpop.f32.mrb[20].mxu0  ;;  %v1602_v53 = vpop.f32.mrb[20].mxu1 }
 0x10f   : > { %v944_v54 = vmin.f32 %v912_v24, %v1602_v53  ;;  %v489_v56 = vpop.f32.mrb[21].mxu0  ;;  %v704_v60 = vpop.f32.mrb[21].mxu1 }
 0x110   : > { %v917_v62 = vmin.f32 %v487_v52, %v489_v56  ;;  %v943_v2 = vmin.f32 %v911_v18, %v704_v60 }
 0x111   : > { %1042 = vmin.xlane.f32.xlu1 %v941_v51 }
 0x112   : > { %v1605_v0 = vpop.f32.mrb[22].mxu1  ;;  %1046 = vmin.xlane.f32.xlu0 %v943_v2  ;;  %v493_v58 = vpop.f32.mrb[22].mxu0 }
 0x113   : > { %v946_v4 = vmin.f32 %v914_v36, %v1605_v0  ;;  %v495_v8 = vpop.f32.mrb[23].mxu0  ;;  %v714_v10 = vpop.f32.mrb[23].mxu1 }
 0x114   : > { %v918_v14 = vmin.f32 %v493_v58, %v495_v8  ;;  %v945_v12 = vmin.f32 %v913_v30, %v714_v10 }
 0x115   : > { %1048 = vmin.xlane.f32.xlu1 %v944_v54 }
 0x116   : > { %v1608_v6 = vpop.f32.mrb[24].mxu1  ;;  %1050 = vmin.xlane.f32.xlu0 %v945_v12  ;;  %v499_v16 = vpop.f32.mrb[24].mxu0 }
 0x117   : > { %v948_v20 = vmin.f32 %v916_v50, %v1608_v6  ;;  %v501_v22 = vpop.f32.mrb[25].mxu0  ;;  %v724_v24 = vpop.f32.mrb[25].mxu1 }
 0x118   : > { %v919_v26 = vmin.f32 %v499_v16, %v501_v22  ;;  %v947_v28 = vmin.f32 %v915_v43, %v724_v24 }
 0x119   : > { %1052 = vmin.xlane.f32.xlu1 %v946_v4 }
 0x11a   : > { %v1611_v18 = vpop.f32.mrb[26].mxu1  ;;  %1054 = vmin.xlane.f32.xlu0 %v947_v28  ;;  %v505_v32 = vpop.f32.mrb[26].mxu0 }
 0x11b   : > { %v950_v34 = vmin.f32 %v918_v14, %v1611_v18  ;;  %v507_v38 = vpop.f32.mrb[27].mxu0  ;;  %v734_v36 = vpop.f32.mrb[27].mxu1 }
 0x11c   : > { %v920_v39 = vmin.f32 %v505_v32, %v507_v38  ;;  %v949_v40 = vmin.f32 %v917_v62, %v734_v36 }
 0x11d   : > { %1056 = vmin.xlane.f32.xlu1 %v948_v20 }
 0x11e   : > { %v1614_v30 = vpop.f32.mrb[28].mxu1  ;;  %1058 = vmin.xlane.f32.xlu0 %v949_v40  ;;  %v511_v41 = vpop.f32.mrb[28].mxu0 }
 0x11f   : > { %v952_v42 = vmin.f32 %v920_v39, %v1614_v30  ;;  %v513_v44 = vpop.f32.mrb[29].mxu0  ;;  %v744_v45 = vpop.f32.mrb[29].mxu1 }
 0x120   : > { %v921_v46 = vmin.f32 %v511_v41, %v513_v44  ;;  %v951_v47 = vmin.f32 %v919_v26, %v744_v45 }
 0x121   : > { %1060 = vmin.xlane.f32.xlu1 %v950_v34 }
 0x122   : > { %v1617_v43 = vpop.f32.mrb[30].mxu1  ;;  %1062 = vmin.xlane.f32.xlu0 %v951_v47  ;;  %v517_v48 = vpop.f32.mrb[30].mxu0 }
 0x123   : > { %v519_v49 = vpop.f32.mrb[31].mxu0  ;;  %v754_v50 = vpop.f32.mrb[31].mxu1 }
 0x124   : > { %v922_v51 = vmin.f32 %v517_v48, %v519_v49  ;;  %v953_v52 = vmin.f32 %v921_v46, %v754_v50 }
 0x125   : > { %1064 = vmin.xlane.f32.xlu1 %v952_v42 }
 0x126   : > { %1066 = vmin.xlane.f32.xlu0 %v953_v52  ;;  %v523_v53 = vpop.f32.mrb[32].mxu0  ;;  %v1620_v54 = vpop.f32.mrb[32].mxu1  ;;  %v954_v56 = vmin.f32 %v922_v51, %v1617_v43 }
 0x127   : > { %v525_v60 = vpop.f32.mrb[33].mxu0  ;;  %v764_v62 = vpop.f32.mrb[33].mxu1 }
 0x128   : > { %v923_v2 = vmin.f32 %v523_v53, %v525_v60 }
 0x129   : > { %1068 = vmin.xlane.f32.xlu1 %v954_v56 }
 0x12a   : > { %v955_v0 = vmin.f32 %v923_v2, %v764_v62  ;;  %v529_v58 = vpop.f32.mrb[34].mxu0  ;;  %v1623_v4 = vpop.f32.mrb[34].mxu1 }
 0x12b   : > { %v531_v8 = vpop.f32.mrb[35].mxu0  ;;  %v774_v10 = vpop.f32.mrb[35].mxu1 }
 0x12c   : > { %v924_v14 = vmin.f32 %v529_v58, %v531_v8  ;;  %1070 = vmin.xlane.f32.xlu0 %v955_v0 }
 0x12e   : > { %v535_v12 = vpop.f32.mrb[36].mxu0  ;;  %v1626_v6 = vpop.f32.mrb[36].mxu1  ;;  %v956_v16 = vmin.f32 %v924_v14, %v1620_v54 }
 0x12f   : > { %v537_v20 = vpop.f32.mrb[37].mxu0  ;;  %v784_v22 = vpop.f32.mrb[37].mxu1 }
 0x130   : > { %v925_v24 = vmin.f32 %v535_v12, %v537_v20  ;;  %1072 = vmin.xlane.f32.xlu1 %v956_v16 }
 0x132   : > { %v541_v26 = vpop.f32.mrb[38].mxu0  ;;  %v1629_v28 = vpop.f32.mrb[38].mxu1  ;;  %v957_v18 = vmin.f32 %v925_v24, %v774_v10 }
 0x133   : > { %v543_v32 = vpop.f32.mrb[39].mxu0  ;;  %v794_v34 = vpop.f32.mrb[39].mxu1 }
 0x134   : > { %v926_v38 = vmin.f32 %v541_v26, %v543_v32  ;;  %1074 = vmin.xlane.f32.xlu0 %v957_v18 }
 0x136   : > { %v547_v36 = vpop.f32.mrb[40].mxu0  ;;  %v1632_v39 = vpop.f32.mrb[40].mxu1  ;;  %v958_v40 = vmin.f32 %v926_v38, %v1623_v4 }
 0x137   : > { %v964_v30 = vmin.f32 %v932_v1, %v1632_v39  ;;  %v549_v41 = vpop.f32.mrb[41].mxu0  ;;  %v804_v42 = vpop.f32.mrb[41].mxu1 }
 0x138   : > { %v927_v44 = vmin.f32 %v547_v36, %v549_v41  ;;  %v963_v45 = vmin.f32 %v931_v59, %v804_v42  ;;  %1076 = vmin.xlane.f32.xlu1 %v958_v40 }
 0x13a   : > { %v1635_v46 = vpop.f32.mrb[42].mxu1  ;;  %1086 = vmin.xlane.f32.xlu0 %v963_v45  ;;  %v553_v47 = vpop.f32.mrb[42].mxu0  ;;  %v959_v43 = vmin.f32 %v927_v44, %v784_v22 }
 0x13b   : > { %v966_v48 = vmin.f32 %v934_v13, %v1635_v46  ;;  %v555_v49 = vpop.f32.mrb[43].mxu0  ;;  %v814_v50 = vpop.f32.mrb[43].mxu1 }
 0x13c   : > { %v928_v61 = vmin.f32 %v553_v47, %v555_v49  ;;  %v965_v63 = vmin.f32 %v933_v7, %v814_v50  ;;  %1088 = vmin.xlane.f32.xlu1 %v964_v30 }
 0x13e   : > { %v1638_v1 = vpop.f32.mrb[44].mxu1  ;;  %1078 = vmin.xlane.f32.xlu0 %v959_v43  ;;  %v559_v55 = vpop.f32.mrb[44].mxu0  ;;  %v960_v57 = vmin.f32 %v928_v61, %v1626_v6 }
 0x13f   : > { %v968_v59 = vmin.f32 %v936_v25, %v1638_v1  ;;  %v561_v51 = vpop.f32.mrb[45].mxu0  ;;  %v824_v52 = vpop.f32.mrb[45].mxu1 }
 0x140   : > { %v929_v9 = vmin.f32 %v559_v55, %v561_v51  ;;  %v967_v11 = vmin.f32 %v935_v19, %v824_v52  ;;  %1092 = vmin.xlane.f32.xlu1 %v966_v48 }
 0x142   : > { %v1641_v13 = vpop.f32.mrb[46].mxu1  ;;  %1090 = vmin.xlane.f32.xlu0 %v965_v63  ;;  %v565_v3 = vpop.f32.mrb[46].mxu0  ;;  %v961_v5 = vmin.f32 %v929_v9, %v794_v34 }
 0x143   : > { %v970_v7 = vmin.f32 %v938_v37, %v1641_v13  ;;  %v567_v53 = vpop.f32.mrb[47].mxu0  ;;  %v834_v54 = vpop.f32.mrb[47].mxu1 }
 0x144   : > { %v930_v21 = vmin.f32 %v565_v3, %v567_v53  ;;  %v969_v23 = vmin.f32 %v937_v31, %v834_v54  ;;  %1080 = vmin.xlane.f32.xlu1 %v960_v57 }
 0x146   : > { %1094 = vmin.xlane.f32.xlu0 %v967_v11  ;;  %v962_v15 = vmin.f32 %v930_v21, %v1629_v28 }
 0x148   : > { %1096 = vmin.xlane.f32.xlu1 %v968_v59 }
 0x14a   : > { %1082 = vmin.xlane.f32.xlu0 %v961_v5 }
 0x14c   : > { %1084 = vmin.xlane.f32.xlu1 %v962_v15 }
 0x14e   : > { %1098 = vmin.xlane.f32.xlu0 %v969_v23 }
 0x150   : > { %1100 = vmin.xlane.f32.xlu1 %v970_v7 }
 0x196   : > { %v1041_v17 = vpop.xlane.xlu0 %1040 }
 0x197   : > { %v1103_v19 = vmax.f32 %v1041_v17, 0.0 }
 0x199   : > { %1689 = vrsqrt.f32 %v1103_v19  ;;  %vm1143_vm2 = vcmp.eq.f32.partialorder %v1103_v19, inf  ;;  %v1146_v8 = vand.u32 2147483648, %v1103_v19  ;;  %vm1145_vm3 = vcmp.eq.f32.partialorder %v1103_v19, 0.0 }
 0x19a   : > { %v1039_v25 = vpop.xlane.xlu0 %1038  ;;  %v1045_v33 = vpop.xlane.xlu1 %1044 }
 0x19b   : > { %v1102_v35 = vmax.f32 %v1039_v25, 0.0  ;;  %v1105_v37 = vmax.f32 %v1045_v33, 0.0 }
 0x19d   : > { %1691 = vrsqrt.f32 %v1102_v35  ;;  %vm1136_vm4 = vcmp.eq.f32.partialorder %v1102_v35, inf  ;;  %vm1138_vm5 = vcmp.eq.f32.partialorder %v1102_v35, 0.0  ;;  %v1139_v28 = vand.u32 2147483648, %v1102_v35 }
 0x19e   : > { %1693 = vrsqrt.f32 %v1105_v37  ;;  %v1043_v27 = vpop.xlane.xlu1 %1042  ;;  %vm1157_vm6 = vcmp.eq.f32.partialorder %v1105_v37, inf  ;;  %v1160_v34 = vand.u32 2147483648, %v1105_v37  ;;  %vm1159_vm7 = vcmp.eq.f32.partialorder %v1105_v37, 0.0 }
 0x19f   : > { %v1104_v29 = vmax.f32 %v1043_v27, 0.0  ;;  %v1047_v31 = vpop.xlane.xlu0 %1046 }
 0x1a0   : > { %v2098_v56 = vmax.f32 %v1047_v31, 0.0 }
 0x1a1   : > { %1695 = vrsqrt.f32 %v1104_v29  ;;  %vm1150_vm8 = vcmp.eq.f32.partialorder %v1104_v29, inf  ;;  %vm1152_vm9 = vcmp.eq.f32.partialorder %v1104_v29, 0.0  ;;  %v1153_v47 = vand.u32 2147483648, %v1104_v29 }
 0x1a2   : > { %1697 = vrsqrt.f32 %v2098_v56  ;;  %v1049_v60 = vpop.xlane.xlu1 %1048  ;;  %vm1164_vm10 = vcmp.eq.f32.partialorder %v2098_v56, inf  ;;  %v1167_v49 = vand.u32 2147483648, %v2098_v56  ;;  %vm1166_vm11 = vcmp.eq.f32.partialorder %v2098_v56, 0.0 }
 0x1a3   : > { %v1690_v62 = vpop.eup %1689  ;;  %v2101_v2 = vmax.f32 %v1049_v60, 0.0  ;;  %v1051_v0 = vpop.xlane.xlu0 %1050 }
 0x1a4   : > { %v1142_v58 = vmul.f32 %v1690_v62, %v1103_v19  ;;  %v2103_v4 = vmax.f32 %v1051_v0, 0.0 }
 0x1a5   : > { %1699 = vrsqrt.f32 %v2101_v2  ;;  %vm1171_vm12 = vcmp.eq.f32.partialorder %v2101_v2, inf  ;;  %v1174_v52 = vand.u32 2147483648, %v2101_v2  ;;  %vm1173_vm13 = vcmp.eq.f32.partialorder %v2101_v2, 0.0 }
 0x1a6   : > { %v1144_v10 = vsel %vm1143_vm2, %v1103_v19, %v1142_v58  ;;  %1701 = vrsqrt.f32 %v2103_v4  ;;  %v1053_v14 = vpop.xlane.xlu1 %1052  ;;  %vm1178_vm14 = vcmp.eq.f32.partialorder %v2103_v4, inf  ;;  %v1181_v5 = vand.u32 2147483648, %v2103_v4 }
 0x1a7   : > { %v1692_v12 = vpop.eup %1691  ;;  %v1147_v6 = vsel %vm1145_vm3, %v1146_v8, %v1144_v10  ;;  %v2114_v16 = vmax.f32 %v1053_v14, 0.0  ;;  %v1055_v20 = vpop.xlane.xlu0 %1054  ;;  %vm1180_vm15 = vcmp.eq.f32.partialorder %v2103_v4, 0.0 }
 0x1a8   : > { %v1694_v22 = vpop.eup %1693  ;;  %1360 = vst.msk [vmem:[%s2110_s26 + $0x8] sm:$0xff] %vm1358_vm1, %v1147_v6  ;;  %v1135_v24 = vmul.f32 %v1692_v12, %v1102_v35  ;;  %v2118_v26 = vmax.f32 %v1055_v20, 0.0 }
 0x1a9   : > { %v1156_v18 = vmul.f32 %v1694_v22, %v1105_v37  ;;  %1703 = vrsqrt.f32 %v2114_v16  ;;  %vm1185_vm0 = vcmp.eq.f32.partialorder %v2114_v16, inf  ;;  %vm1187_vm2 = vcmp.eq.f32.partialorder %v2114_v16, 0.0 }
 0x1aa   : > { %v1137_v32 = vsel %vm1136_vm4, %v1102_v35, %v1135_v24  ;;  %1705 = vrsqrt.f32 %v2118_v26  ;;  %v1057_v38 = vpop.xlane.xlu1 %1056  ;;  %v1188_v25 = vand.u32 2147483648, %v2114_v16  ;;  %vm1192_vm3 = vcmp.eq.f32.partialorder %v2118_v26, inf }
 0x1ab   : > { %v1696_v36 = vpop.eup %1695  ;;  %v1140_v39 = vsel %vm1138_vm5, %v1139_v28, %v1137_v32  ;;  %v1158_v40 = vsel %vm1157_vm6, %v1105_v37, %v1156_v18  ;;  %v1059_v30 = vpop.xlane.xlu0 %1058  ;;  %v2124_v45 = vmax.f32 %v1057_v38, 0.0  ;;  %v1195_v37 = vand.u32 2147483648, %v2118_v26 }
 0x1ac   : > { %v1698_v41 = vpop.eup %1697  ;;  %1359 = vst.msk [vmem:[%s2110_s26] sm:$0xff] %vm1358_vm1, %v1140_v39  ;;  %v1161_v42 = vsel %vm1159_vm7, %v1160_v34, %v1158_v40  ;;  %v1149_v44 = vmul.f32 %v1696_v36, %v1104_v29  ;;  %v2126_v46 = vmax.f32 %v1059_v30, 0.0  ;;  %vm1194_vm4 = vcmp.eq.f32.partialorder %v2118_v26, 0.0 }
 0x1ad   : > { %1362 = vst.msk [vmem:[%s2110_s26 + $0x18] sm:$0xff] %vm1358_vm1, %v1161_v42  ;;  %v1163_v43 = vmul.f32 %v1698_v41, %v2098_v56  ;;  %1707 = vrsqrt.f32 %v2124_v45  ;;  %vm1199_vm5 = vcmp.eq.f32.partialorder %v2124_v45, inf  ;;  %v1202_v10 = vand.u32 2147483648, %v2124_v45 }
 0x1ae   : > { %v1151_v48 = vsel %vm1150_vm8, %v1104_v29, %v1149_v44  ;;  %v1061_v50 = vpop.xlane.xlu1 %1060  ;;  %1709 = vrsqrt.f32 %v2126_v46  ;;  %vm1201_vm6 = vcmp.eq.f32.partialorder %v2124_v45, 0.0  ;;  %vm1206_vm7 = vcmp.eq.f32.partialorder %v2126_v46, inf }
 0x1af   : > { %v1700_v61 = vpop.eup %1699  ;;  %v1154_v63 = vsel %vm1152_vm9, %v1153_v47, %v1151_v48  ;;  %v1165_v1 = vsel %vm1164_vm10, %v2098_v56, %v1163_v43  ;;  %v1063_v55 = vpop.xlane.xlu0 %1062  ;;  %v2145_v11 = vmax.f32 %v1061_v50, 0.0  ;;  %v1209_v6 = vand.u32 2147483648, %v2126_v46 }
 0x1b0   : > { %v1702_v57 = vpop.eup %1701  ;;  %1361 = vst.msk [vmem:[%s2110_s26 + $0x10] sm:$0xff] %vm1358_vm1, %v1154_v63  ;;  %v1168_v59 = vsel %vm1166_vm11, %v1167_v49, %v1165_v1  ;;  %v1170_v51 = vmul.f32 %v1700_v61, %v2101_v2  ;;  %v2147_v13 = vmax.f32 %v1063_v55, 0.0  ;;  %vm1208_vm8 = vcmp.eq.f32.partialorder %v2126_v46, 0.0 }
 0x1b1   : > { %1363 = vst.msk [vmem:[%s2110_s26 + $0x20] sm:$0xff] %vm1358_vm1, %v1168_v59  ;;  %v1177_v9 = vmul.f32 %v1702_v57, %v2103_v4  ;;  %1711 = vrsqrt.f32 %v2145_v11  ;;  %vm1213_vm9 = vcmp.eq.f32.partialorder %v2145_v11, inf  ;;  %v1216_v34 = vand.u32 2147483648, %v2145_v11 }
 0x1b2   : > { %v1172_v3 = vsel %vm1171_vm12, %v2101_v2, %v1170_v51  ;;  %v1065_v7 = vpop.xlane.xlu1 %1064  ;;  %1713 = vrsqrt.f32 %v2147_v13  ;;  %vm1215_vm10 = vcmp.eq.f32.partialorder %v2145_v11, 0.0  ;;  %vm1220_vm11 = vcmp.eq.f32.partialorder %v2147_v13, inf }
 0x1b3   : > { %v1704_v53 = vpop.eup %1703  ;;  %v1175_v54 = vsel %vm1173_vm13, %v1174_v52, %v1172_v3  ;;  %v1179_v21 = vsel %vm1178_vm14, %v2103_v4, %v1177_v9  ;;  %v1067_v23 = vpop.xlane.xlu0 %1066  ;;  %v2169_v27 = vmax.f32 %v1065_v7, 0.0  ;;  %v1223_v30 = vand.u32 2147483648, %v2147_v13 }
 0x1b4   : > { %v1706_v15 = vpop.eup %1705  ;;  %1364 = vst.msk [vmem:[%s2110_s26 + $0x28] sm:$0xff] %vm1358_vm1, %v1175_v54  ;;  %v1182_v17 = vsel %vm1180_vm15, %v1181_v5, %v1179_v21  ;;  %v1184_v19 = vmul.f32 %v1704_v53, %v2114_v16  ;;  %v2171_v29 = vmax.f32 %v1067_v23, 0.0  ;;  %vm1222_vm12 = vcmp.eq.f32.partialorder %v2147_v13, 0.0 }
 0x1b5   : > { %1365 = vst.msk [vmem:[%s2110_s26 + $0x30] sm:$0xff] %vm1358_vm1, %v1182_v17  ;;  %v1191_v33 = vmul.f32 %v1706_v15, %v2118_v26  ;;  %1715 = vrsqrt.f32 %v2169_v27  ;;  %vm1227_vm13 = vcmp.eq.f32.partialorder %v2169_v27, inf  ;;  %vm1229_vm14 = vcmp.eq.f32.partialorder %v2169_v27, 0.0 }
 0x1b6   : > { %v1186_v35 = vsel %vm1185_vm0, %v2114_v16, %v1184_v19  ;;  %v1069_v31 = vpop.xlane.xlu1 %1068  ;;  %1717 = vrsqrt.f32 %v2171_v29  ;;  %v1230_v48 = vand.u32 2147483648, %v2169_v27  ;;  %vm1234_vm15 = vcmp.eq.f32.partialorder %v2171_v29, inf }
 0x1b7   : > { %v1189_v56 = vsel %vm1187_vm2, %v1188_v25, %v1186_v35  ;;  %v1193_v60 = vsel %vm1192_vm3, %v2118_v26, %v1191_v33  ;;  %v2175_v62 = vmax.f32 %v1069_v31, 0.0  ;;  %v1708_v2 = vpop.eup %1707  ;;  %vm1236_vm0 = vcmp.eq.f32.partialorder %v2171_v29, 0.0 }
 0x1b8   : > { %1366 = vst.msk [vmem:[%s2110_s26 + $0x38] sm:$0xff] %vm1358_vm1, %v1189_v56  ;;  %v1196_v0 = vsel %vm1194_vm4, %v1195_v37, %v1193_v60  ;;  %v1710_v58 = vpop.eup %1709  ;;  %v1198_v4 = vmul.f32 %v1708_v2, %v2124_v45  ;;  %v1237_v63 = vand.u32 2147483648, %v2171_v29 }
 0x1b9   : > { %1367 = vst.msk [vmem:[%s2110_s26 + $0x40] sm:$0xff] %vm1358_vm1, %v1196_v0  ;;  %v1071_v8 = vpop.xlane.xlu0 %1070  ;;  %v1205_v14 = vmul.f32 %v1710_v58, %v2126_v46  ;;  %1719 = vrsqrt.f32 %v2175_v62  ;;  %vm1241_vm2 = vcmp.eq.f32.partialorder %v2175_v62, inf  ;;  %v1244_v51 = vand.u32 2147483648, %v2175_v62 }
 0x1ba   : > { %v1200_v12 = vsel %vm1199_vm5, %v2124_v45, %v1198_v4  ;;  %v2194_v22 = vmax.f32 %v1071_v8, 0.0  ;;  %vm1243_vm3 = vcmp.eq.f32.partialorder %v2175_v62, 0.0 }
 0x1bb   : > { %v1203_v16 = vsel %vm1201_vm6, %v1202_v10, %v1200_v12  ;;  %v1207_v20 = vsel %vm1206_vm7, %v2126_v46, %v1205_v14  ;;  %v1712_v24 = vpop.eup %1711 }
 0x1bc   : > { %1368 = vst.msk [vmem:[%s2110_s26 + $0x48] sm:$0xff] %vm1358_vm1, %v1203_v16  ;;  %v1210_v26 = vsel %vm1208_vm8, %v1209_v6, %v1207_v20  ;;  %v1212_v18 = vmul.f32 %v1712_v24, %v2145_v11  ;;  %1721 = vrsqrt.f32 %v2194_v22  ;;  %v1714_v32 = vpop.eup %1713  ;;  %vm1248_vm4 = vcmp.eq.f32.partialorder %v2194_v22, inf }
 0x1bd   : > { %v1073_v28 = vpop.xlane.xlu1 %1072  ;;  %1369 = vst.msk [vmem:[%s2110_s26 + $0x50] sm:$0xff] %vm1358_vm1, %v1210_v26  ;;  %v1219_v39 = vmul.f32 %v1714_v32, %v2147_v13  ;;  %v1251_v21 = vand.u32 2147483648, %v2194_v22  ;;  %vm1250_vm5 = vcmp.eq.f32.partialorder %v2194_v22, 0.0 }
 0x1be   : > { %v2204_v38 = vmax.f32 %v1073_v28, 0.0  ;;  %v1214_v36 = vsel %vm1213_vm9, %v2145_v11, %v1212_v18 }
 0x1bf   : > { %v1217_v40 = vsel %vm1215_vm10, %v1216_v34, %v1214_v36  ;;  %v1716_v42 = vpop.eup %1715  ;;  %v1221_v44 = vsel %vm1220_vm11, %v2147_v13, %v1219_v39 }
 0x1c0   : > { %1723 = vrsqrt.f32 %v2204_v38  ;;  %1370 = vst.msk [vmem:[%s2110_s26 + $0x58] sm:$0xff] %vm1358_vm1, %v1217_v40  ;;  %v1718_v46 = vpop.eup %1717  ;;  %v1224_v47 = vsel %vm1222_vm12, %v1223_v30, %v1221_v44  ;;  %v1226_v43 = vmul.f32 %v1716_v42, %v2169_v27  ;;  %vm1255_vm6 = vcmp.eq.f32.partialorder %v2204_v38, inf }
 0x1c1   : > { %v1075_v41 = vpop.xlane.xlu0 %1074  ;;  %1371 = vst.msk [vmem:[%s2110_s26 + $0x60] sm:$0xff] %vm1358_vm1, %v1224_v47  ;;  %v1233_v50 = vmul.f32 %v1718_v46, %v2171_v29  ;;  %v1258_v35 = vand.u32 2147483648, %v2204_v38  ;;  %vm1257_vm7 = vcmp.eq.f32.partialorder %v2204_v38, 0.0 }
 0x1c2   : > { %v2217_v45 = vmax.f32 %v1075_v41, 0.0  ;;  %v1228_v61 = vsel %vm1227_vm13, %v2169_v27, %v1226_v43 }
 0x1c3   : > { %v1720_v49 = vpop.eup %1719  ;;  %v1231_v57 = vsel %vm1229_vm14, %v1230_v48, %v1228_v61  ;;  %v1235_v59 = vsel %vm1234_vm15, %v2171_v29, %v1233_v50 }
 0x1c4   : > { %1725 = vrsqrt.f32 %v2217_v45  ;;  %v1240_v1 = vmul.f32 %v1720_v49, %v2175_v62  ;;  %1372 = vst.msk [vmem:[%s2110_s26 + $0x68] sm:$0xff] %vm1358_vm1, %v1231_v57  ;;  %v1238_v9 = vsel %vm1236_vm0, %v1237_v63, %v1235_v59  ;;  %vm1262_vm8 = vcmp.eq.f32.partialorder %v2217_v45, inf }
 0x1c5   : > { %v1077_v55 = vpop.xlane.xlu1 %1076  ;;  %1373 = vst.msk [vmem:[%s2110_s26 + $0x70] sm:$0xff] %vm1358_vm1, %v1238_v9  ;;  %v1265_v0 = vand.u32 2147483648, %v2217_v45  ;;  %vm1264_vm9 = vcmp.eq.f32.partialorder %v2217_v45, 0.0 }
 0x1c6   : > { %v2234_v52 = vmax.f32 %v1077_v55, 0.0  ;;  %v1242_v11 = vsel %vm1241_vm2, %v2175_v62, %v1240_v1  ;;  %v1722_v3 = vpop.eup %1721 }
 0x1c7   : > { %v1087_v13 = vpop.xlane.xlu0 %1086  ;;  %v1245_v5 = vsel %vm1243_vm3, %v1244_v51, %v1242_v11  ;;  %v1247_v7 = vmul.f32 %v1722_v3, %v2194_v22 }
 0x1c8   : > { %1727 = vrsqrt.f32 %v2234_v52  ;;  %1374 = vst.msk [vmem:[%s2110_s26 + $0x78] sm:$0xff] %vm1358_vm1, %v1245_v5  ;;  %v2246_v53 = vmax.f32 %v1087_v13, 0.0  ;;  %vm1269_vm10 = vcmp.eq.f32.partialorder %v2234_v52, inf  ;;  %v1272_v20 = vand.u32 2147483648, %v2234_v52 }
 0x1c9   : > { %v1089_v54 = vpop.xlane.xlu1 %1088  ;;  %v1249_v17 = vsel %vm1248_vm4, %v2194_v22, %v1247_v7  ;;  %vm1271_vm11 = vcmp.eq.f32.partialorder %v2234_v52, 0.0 }
 0x1ca   : > { %v2250_v23 = vmax.f32 %v1089_v54, 0.0  ;;  %v1724_v15 = vpop.eup %1723  ;;  %1729 = vrsqrt.f32 %v2246_v53  ;;  %v1252_v25 = vsel %vm1250_vm5, %v1251_v21, %v1249_v17  ;;  %vm1304_vm12 = vcmp.eq.f32.partialorder %v2246_v53, inf }
 0x1cb   : > { %v1079_v19 = vpop.xlane.xlu0 %1078  ;;  %v1254_v33 = vmul.f32 %v1724_v15, %v2204_v38  ;;  %1375 = vst.msk [vmem:[%s2110_s26 + $0x80] sm:$0xff] %vm1358_vm1, %v1252_v25  ;;  %vm1306_vm13 = vcmp.eq.f32.partialorder %v2246_v53, 0.0  ;;  %v1307_v36 = vand.u32 2147483648, %v2246_v53 }
 0x1cc   : > { %1731 = vrsqrt.f32 %v2250_v23  ;;  %v2261_v37 = vmax.f32 %v1079_v19, 0.0  ;;  %vm1311_vm14 = vcmp.eq.f32.partialorder %v2250_v23, inf  ;;  %v1314_v41 = vand.u32 2147483648, %v2250_v23 }
 0x1cd   : > { %v1093_v27 = vpop.xlane.xlu1 %1092  ;;  %v1256_v31 = vsel %vm1255_vm6, %v2204_v38, %v1254_v33  ;;  %vm1313_vm15 = vcmp.eq.f32.partialorder %v2250_v23, 0.0 }
 0x1ce   : > { %v1726_v29 = vpop.eup %1725  ;;  %v2265_v56 = vmax.f32 %v1093_v27, 0.0  ;;  %v1259_v60 = vsel %vm1257_vm7, %v1258_v35, %v1256_v31  ;;  %1733 = vrsqrt.f32 %v2261_v37  ;;  %vm1276_vm0 = vcmp.eq.f32.partialorder %v2261_v37, inf }
 0x1cf   : > { %v1261_v62 = vmul.f32 %v1726_v29, %v2217_v45  ;;  %v1091_v2 = vpop.xlane.xlu0 %1090  ;;  %1376 = vst.msk [vmem:[%s2110_s26 + $0x88] sm:$0xff] %vm1358_vm1, %v1259_v60  ;;  %vm1278_vm2 = vcmp.eq.f32.partialorder %v2261_v37, 0.0  ;;  %v1279_v61 = vand.u32 2147483648, %v2261_v37 }
 0x1d0   : > { %1735 = vrsqrt.f32 %v2265_v56  ;;  %v2276_v4 = vmax.f32 %v1091_v2, 0.0  ;;  %vm1325_vm3 = vcmp.eq.f32.partialorder %v2265_v56, inf  ;;  %v1328_v55 = vand.u32 2147483648, %v2265_v56 }
 0x1d1   : > { %v1263_v58 = vsel %vm1262_vm8, %v2217_v45, %v1261_v62  ;;  %v1081_v8 = vpop.xlane.xlu1 %1080  ;;  %vm1327_vm4 = vcmp.eq.f32.partialorder %v2265_v56, 0.0 }
 0x1d2   : > { %v1728_v10 = vpop.eup %1727  ;;  %v1266_v14 = vsel %vm1264_vm9, %v1265_v0, %v1263_v58  ;;  %v2278_v12 = vmax.f32 %v1081_v8, 0.0  ;;  %1737 = vrsqrt.f32 %v2276_v4  ;;  %vm1318_vm5 = vcmp.eq.f32.partialorder %v2276_v4, inf }
 0x1d3   : > { %1377 = vst.msk [vmem:[%s2110_s26 + $0x90] sm:$0xff] %vm1358_vm1, %v1266_v14  ;;  %v1268_v6 = vmul.f32 %v1728_v10, %v2234_v52  ;;  %v1095_v16 = vpop.xlane.xlu0 %1094  ;;  %v1321_v5 = vand.u32 2147483648, %v2276_v4  ;;  %vm1320_vm6 = vcmp.eq.f32.partialorder %v2276_v4, 0.0 }
 0x1d4   : > { %1739 = vrsqrt.f32 %v2278_v12  ;;  %v1730_v22 = vpop.eup %1729  ;;  %v2289_v26 = vmax.f32 %v1095_v16, 0.0  ;;  %vm1283_vm7 = vcmp.eq.f32.partialorder %v2278_v12, inf  ;;  %vm1285_vm8 = vcmp.eq.f32.partialorder %v2278_v12, 0.0 }
 0x1d5   : > { %v1270_v24 = vsel %vm1269_vm10, %v2234_v52, %v1268_v6  ;;  %v1097_v28 = vpop.xlane.xlu1 %1096  ;;  %v1303_v34 = vmul.f32 %v1730_v22, %v2246_v53 }
 0x1d6   : > { %v1732_v18 = vpop.eup %1731  ;;  %v1273_v32 = vsel %vm1271_vm11, %v1272_v20, %v1270_v24  ;;  %v2293_v38 = vmax.f32 %v1097_v28, 0.0  ;;  %1741 = vrsqrt.f32 %v2289_v26  ;;  %vm1332_vm9 = vcmp.eq.f32.partialorder %v2289_v26, inf }
 0x1d7   : > { %1378 = vst.msk [vmem:[%s2110_s26 + $0x98] sm:$0xff] %vm1358_vm1, %v1273_v32  ;;  %v1310_v39 = vmul.f32 %v1732_v18, %v2250_v23  ;;  %v1083_v40 = vpop.xlane.xlu0 %1082  ;;  %v1305_v30 = vsel %vm1304_vm12, %v2246_v53, %v1303_v34  ;;  %vm1334_vm10 = vcmp.eq.f32.partialorder %v2289_v26, 0.0 }
 0x1d8   : > { %1743 = vrsqrt.f32 %v2293_v38  ;;  %v1734_v42 = vpop.eup %1733  ;;  %v1308_v44 = vsel %vm1306_vm13, %v1307_v36, %v1305_v30  ;;  %v2310_v49 = vmax.f32 %v1083_v40, 0.0  ;;  %vm1339_vm11 = vcmp.eq.f32.partialorder %v2293_v38, inf }
 0x1d9   : > { %v1312_v45 = vsel %vm1311_vm14, %v2250_v23, %v1310_v39  ;;  %v1085_v46 = vpop.xlane.xlu1 %1084  ;;  %1383 = vst.msk [vmem:[%s2110_s26 + $0xc0] sm:$0xff] %vm1358_vm1, %v1308_v44  ;;  %v1275_v48 = vmul.f32 %v1734_v42, %v2261_v37  ;;  %v1286_v23 = vand.u32 2147483648, %v2278_v12  ;;  %v1342_v31 = vand.u32 2147483648, %v2293_v38 }
 0x1da   : > { %v1736_v47 = vpop.eup %1735  ;;  %v1315_v43 = vsel %vm1313_vm15, %v1314_v41, %v1312_v45  ;;  %v2312_v50 = vmax.f32 %v1085_v46, 0.0  ;;  %1745 = vrsqrt.f32 %v2310_v49  ;;  %vm1341_vm12 = vcmp.eq.f32.partialorder %v2293_v38, 0.0 }
 0x1db   : > { %1384 = vst.msk [vmem:[%s2110_s26 + $0xc8] sm:$0xff] %vm1358_vm1, %v1315_v43  ;;  %v1324_v63 = vmul.f32 %v1736_v47, %v2265_v56  ;;  %v1277_v1 = vsel %vm1276_vm0, %v2261_v37, %v1275_v48  ;;  %v1099_v57 = vpop.xlane.xlu0 %1098  ;;  %v1335_v37 = vand.u32 2147483648, %v2289_v26  ;;  %vm1290_vm13 = vcmp.eq.f32.partialorder %v2310_v49, inf }
 0x1dc   : > { %v1738_v59 = vpop.eup %1737  ;;  %v1280_v51 = vsel %vm1278_vm2, %v1279_v61, %v1277_v1  ;;  %1747 = vrsqrt.f32 %v2312_v50  ;;  %v1132_v53 = vmax.f32 %v1099_v57, 0.0  ;;  %vm1292_vm14 = vcmp.eq.f32.partialorder %v2310_v49, 0.0 }
 0x1dd   : > { %v1326_v52 = vsel %vm1325_vm3, %v2265_v56, %v1324_v63  ;;  %v1101_v9 = vpop.xlane.xlu1 %1100  ;;  %1379 = vst.msk [vmem:[%s2110_s26 + $0xa0] sm:$0xff] %vm1358_vm1, %v1280_v51  ;;  %v1317_v3 = vmul.f32 %v1738_v59, %v2276_v4  ;;  %vm1297_vm15 = vcmp.eq.f32.partialorder %v2312_v50, inf  ;;  %v1300_v14 = vand.u32 2147483648, %v2312_v50 }
 0x1de   : > { %v1740_v11 = vpop.eup %1739  ;;  %v1329_v13 = vsel %vm1327_vm4, %v1328_v55, %v1326_v52  ;;  %v1133_v54 = vmax.f32 %v1101_v9, 0.0  ;;  %1749 = vrsqrt.f32 %v1132_v53  ;;  %vm1299_vm0 = vcmp.eq.f32.partialorder %v2312_v50, 0.0 }
 0x1df   : > { %1386 = vst.msk [vmem:[%s2110_s26 + $0xd8] sm:$0xff] %vm1358_vm1, %v1329_v13  ;;  %v1282_v7 = vmul.f32 %v1740_v11, %v2278_v12  ;;  %v1319_v21 = vsel %vm1318_vm5, %v2276_v4, %v1317_v3  ;;  %v1293_v4 = vand.u32 2147483648, %v2310_v49  ;;  %vm1346_vm2 = vcmp.eq.f32.partialorder %v1132_v53, inf }
 0x1e0   : > { %v1742_v15 = vpop.eup %1741  ;;  %v1322_v17 = vsel %vm1320_vm6, %v1321_v5, %v1319_v21  ;;  %1751 = vrsqrt.f32 %v1133_v54  ;;  %vm1348_vm3 = vcmp.eq.f32.partialorder %v1132_v53, 0.0  ;;  %vm1353_vm4 = vcmp.eq.f32.partialorder %v1133_v54, inf }
 0x1e1   : > { %v1284_v19 = vsel %vm1283_vm7, %v2278_v12, %v1282_v7  ;;  %1385 = vst.msk [vmem:[%s2110_s26 + $0xd0] sm:$0xff] %vm1358_vm1, %v1322_v17  ;;  %v1331_v35 = vmul.f32 %v1742_v15, %v2289_v26  ;;  %v1356_v34 = vand.u32 2147483648, %v1133_v54  ;;  %vm1355_vm5 = vcmp.eq.f32.partialorder %v1133_v54, 0.0 }
 0x1e2   : > { %v1744_v25 = vpop.eup %1743  ;;  %v1287_v33 = vsel %vm1285_vm8, %v1286_v23, %v1284_v19 }
 0x1e3   : > { %1380 = vst.msk [vmem:[%s2110_s26 + $0xa8] sm:$0xff] %vm1358_vm1, %v1287_v33  ;;  %v1338_v27 = vmul.f32 %v1744_v25, %v2293_v38  ;;  %v1333_v29 = vsel %vm1332_vm9, %v2289_v26, %v1331_v35  ;;  %v1349_v26 = vand.u32 2147483648, %v1132_v53 }
 0x1e4   : > { %v1336_v56 = vsel %vm1334_vm10, %v1335_v37, %v1333_v29  ;;  %v1746_v62 = vpop.eup %1745 }
 0x1e5   : > { %v1340_v60 = vsel %vm1339_vm11, %v2293_v38, %v1338_v27  ;;  %1387 = vst.msk [vmem:[%s2110_s26 + $0xe0] sm:$0xff] %vm1358_vm1, %v1336_v56  ;;  %v1289_v58 = vmul.f32 %v1746_v62, %v2310_v49 }
 0x1e6   : > { %v1343_v2 = vsel %vm1341_vm12, %v1342_v31, %v1340_v60  ;;  %v1748_v0 = vpop.eup %1747 }
 0x1e7   : > { %1388 = vst.msk [vmem:[%s2110_s26 + $0xe8] sm:$0xff] %vm1358_vm1, %v1343_v2  ;;  %v1296_v8 = vmul.f32 %v1748_v0, %v2312_v50  ;;  %v1291_v10 = vsel %vm1290_vm13, %v2310_v49, %v1289_v58 }
 0x1e8   : > { %v1294_v12 = vsel %vm1292_vm14, %v1293_v4, %v1291_v10  ;;  %v1750_v16 = vpop.eup %1749 }
 0x1e9   : > { %v1298_v6 = vsel %vm1297_vm15, %v2312_v50, %v1296_v8  ;;  %1381 = vst.msk [vmem:[%s2110_s26 + $0xb0] sm:$0xff] %vm1358_vm1, %v1294_v12  ;;  %v1345_v22 = vmul.f32 %v1750_v16, %v1132_v53 }
 0x1ea   : > { %v1301_v20 = vsel %vm1299_vm0, %v1300_v14, %v1298_v6  ;;  %v1752_v24 = vpop.eup %1751 }
 0x1eb   : > { %1382 = vst.msk [vmem:[%s2110_s26 + $0xb8] sm:$0xff] %vm1358_vm1, %v1301_v20  ;;  %v1347_v28 = vsel %vm1346_vm2, %v1132_v53, %v1345_v22  ;;  %v1352_v18 = vmul.f32 %v1752_v24, %v1133_v54 }
 0x1ec   : > { %v1350_v32 = vsel %vm1348_vm3, %v1349_v26, %v1347_v28 }
 0x1ed   : > { %1389 = vst.msk [vmem:[%s2110_s26 + $0xf0] sm:$0xff] %vm1358_vm1, %v1350_v32  ;;  %v1354_v38 = vsel %vm1353_vm4, %v1133_v54, %v1352_v18 }
 0x1ee   : > { %v1357_v36 = vsel %vm1355_vm5, %v1356_v34, %v1354_v38 }
 0x1ef   : > { %1390 = vst.msk [vmem:[%s2110_s26 + $0xf8] sm:$0xff] %vm1358_vm1, %v1357_v36 }
 0x1f0 PF: > { %s12_s11 = sadd.s32 1, %s1775_s11   ;;  %s2389_s9 = smov %s1771_s10 }
 0x1f1   : > { %p9_p5 = scmp.ge.s32.totalorder %s12_s11, 4   ;;  %s2390_s10 = smov %s2392_s12 }
 0x1f3   :  { %11 = sbr.rel (!%p9_p5) target bundleno = 2 (0x2), region = 69 }

</bundles_post_ra>
